<compile_context>
chip_gen: v5e
topology: v5e:2x2
jax: 0.10.0
libtpu: 0.0.40
codegen_flags: <defaults>
</compile_context>

<pallas_src>
import functools

import jax
import jax.numpy as jnp
import numpy as np
from jax.experimental import pallas as pl
from jax.experimental.pallas import tpu as pltpu

# Constants from the reference module.
INPUT_SIZE = 66
E_NODE = 50
A_NODE = 20

_LANES = 128


def _round_up(n, m):
    return ((n + m - 1) // m) * m


def attention_kernel(x_ref, ew_ref, eb_ref, aw_ref, ab_ref, out_ref, *, F, An, Fp):
    x = x_ref[...]                                                     # (TB, F)
    # E = tanh(x @ E_W + E_b)                                          # (TB, En)
    E = jnp.tanh(
        jnp.dot(x, ew_ref[...], preferred_element_type=jnp.float32) + eb_ref[...]
    )
    # One lane-dense MXU matmul for all features / attention nodes:
    #   fc_flat[b, a*Fp + f] = sum_e E[b, e] * A_W[f, e, a] + A_b[f, a]
    fc_flat = (
        jnp.dot(E, aw_ref[...], preferred_element_type=jnp.float32) + ab_ref[...]
    )                                                                  # (TB, An*Fp)

    # Softmax over the A_node axis using An static, 128-lane-aligned slices of
    # fc_flat (zero-cost views; stays on VPU+EUP, no relayout, no XLU).
    m = fc_flat[:, 0:Fp]
    for a in range(1, An):
        m = jnp.maximum(m, fc_flat[:, a * Fp:(a + 1) * Fp])            # (TB, Fp)
    ex1 = jnp.exp(fc_flat[:, Fp:2 * Fp] - m)                           # numerator (a == 1)
    den = ex1
    for a in range(An):
        if a == 1:
            continue
        den = den + jnp.exp(fc_flat[:, a * Fp:(a + 1) * Fp] - m)       # (TB, Fp)

    inv = pl.reciprocal(den, approx=True)                              # EUP
    inv = inv * (2.0 - den * inv)                                      # 1 NR step -> ~f32 acc.
    attn1 = ex1 * inv                                                  # (TB, Fp)

    out_ref[...] = (x * attn1[:, :F]).astype(out_ref.dtype)            # (TB, F)


def prepack_weights(E_W, E_b, A_W, A_b):
    """One-time weight repacking (hoisted out of the per-call forward).

    A_W: (F, En, An) -> feature axis padded to 128 lanes -> (En, An*Fp)
    A_b: (F, An)     -> (1, An*Fp)
    so that fc_flat[b, a*Fp + f] = sum_e E[b,e] * A_W[f,e,a] + A_b[f,a].
    """
    F, En = E_W.shape
    An = A_W.shape[2]
    Fp = _round_up(max(F, _LANES), _LANES)

    ew = jnp.asarray(E_W, jnp.float32)                                 # (F, En)
    eb2 = jnp.asarray(E_b, jnp.float32).reshape(1, En)                 # (1, En)
    aw_p = jnp.pad(jnp.asarray(A_W, jnp.float32), ((0, Fp - F), (0, 0), (0, 0)))
    aw2 = jnp.transpose(aw_p, (1, 2, 0)).reshape(En, An * Fp)          # (En, An*Fp)
    ab_p = jnp.pad(jnp.asarray(A_b, jnp.float32), ((0, Fp - F), (0, 0)))
    ab2 = jnp.transpose(ab_p, (1, 0)).reshape(1, An * Fp)              # (1, An*Fp)

    packed = (ew, eb2, aw2, ab2)
    return jax.block_until_ready(jax.device_put(packed))


def attention_forward(x, packed):
    ew, eb2, aw2, ab2 = packed
    B, F = x.shape
    En = ew.shape[1]
    AnFp = aw2.shape[1]
    Fp = _round_up(max(F, _LANES), _LANES)
    An = AnFp // Fp
    assert An >= 2, "softmax column 1 requires A_node >= 2"

    # Batch tile: aim for >= 2 grid steps (v7x megacore sharding via
    # dimension_semantics) while keeping tiles large; cap at 512 rows so the
    # (TB, An*Fp) fc_flat intermediate stays small vs. v7x's scoped VMEM.
    TB = min(512, _round_up(max((B + 1) // 2, 8), 8))
    nb = pl.cdiv(B, TB)
    Bp = nb * TB
    x_in = x if Bp == B else jnp.pad(x, ((0, Bp - B), (0, 0)))

    kernel = functools.partial(attention_kernel, F=F, An=An, Fp=Fp)

    out = pl.pallas_call(
        kernel,
        out_shape=jax.ShapeDtypeStruct((Bp, F), x.dtype),
        grid=(nb,),
        in_specs=[
            pl.BlockSpec((TB, F), lambda i: (i, 0)),           # x tile (unpadded lanes)
            pl.BlockSpec((F, En), lambda i: (0, 0)),           # E_W   (resident)
            pl.BlockSpec((1, En), lambda i: (0, 0)),           # E_b   (resident)
            pl.BlockSpec((En, AnFp), lambda i: (0, 0)),        # A_W2  (resident)
            pl.BlockSpec((1, AnFp), lambda i: (0, 0)),         # A_b2  (resident)
        ],
        out_specs=pl.BlockSpec((TB, F), lambda i: (i, 0)),
        compiler_params=pltpu.CompilerParams(
            dimension_semantics=("parallel",)
        ),
    )(x_in, ew, eb2, aw2, ab2)
    return out if Bp == B else out[:B]


def attention_reference(x, E_W, E_b, A_W, A_b):
    """Pure-JAX reference mirroring the PyTorch forward."""
    E = jnp.tanh(x @ E_W + E_b)
    fc = jnp.einsum("be,fea->fba", E, A_W) + A_b[:, None, :]
    sm = jax.nn.softmax(fc, axis=-1)
    A = sm[:, :, 1].T
    return x * A


if __name__ == "__main__":
    key = jax.random.PRNGKey(0)
    k1, k2, k3, k4, k5 = jax.random.split(key, 5)
    B = 8  # small batch

    x = jax.random.normal(k1, (B, INPUT_SIZE), dtype=jnp.float32)
    E_W = jax.random.normal(k2, (INPUT_SIZE, E_NODE), dtype=jnp.float32)
    E_b = jax.random.normal(k3, (E_NODE,), dtype=jnp.float32)
    A_W = jax.random.normal(k4, (INPUT_SIZE, E_NODE, A_NODE), dtype=jnp.float32)
    A_b = jax.random.normal(k5, (INPUT_SIZE, A_NODE), dtype=jnp.float32)

    packed = prepack_weights(E_W, E_b, A_W, A_b)   # one-time repack, off the hot path
    out = attention_forward(x, packed)
    jax.block_until_ready(out)

    ref = attention_reference(x, E_W, E_b, A_W, A_b)
    np.testing.assert_allclose(np.asarray(out), np.asarray(ref), rtol=1e-4, atol=1e-4)
    print("KERNEL_OK")
</pallas_src>

<mosaic_0001>
module attributes {stable_mosaic.version = 11 : i64} {
  func.func @attention_kernel(%arg0: i32, %arg1: memref<8x66xf32, #tpu.memory_space<vmem>>, %arg2: memref<66x50xf32, #tpu.memory_space<vmem>>, %arg3: memref<1x50xf32, #tpu.memory_space<vmem>>, %arg4: memref<50x2560xf32, #tpu.memory_space<vmem>>, %arg5: memref<1x2560xf32, #tpu.memory_space<vmem>>, %arg6: memref<8x66xf32, #tpu.memory_space<vmem>>) attributes {dimension_semantics = [#tpu.dimension_semantics<parallel>], iteration_bounds = array<i64: 1>, scalar_prefetch = 0 : i64, scratch_operands = 0 : i64, tpu.core_type = #tpu.core_type<tc>, window_params = [{transform_indices = @transform_0, window_bounds = array<i64: 8, 66>}, {pipeline_mode = #tpu.pipeline_mode<synchronous>, transform_indices = @transform_1, window_bounds = array<i64: 66, 50>}, {pipeline_mode = #tpu.pipeline_mode<synchronous>, transform_indices = @transform_2, window_bounds = array<i64: 1, 50>}, {pipeline_mode = #tpu.pipeline_mode<synchronous>, transform_indices = @transform_3, window_bounds = array<i64: 50, 2560>}, {pipeline_mode = #tpu.pipeline_mode<synchronous>, transform_indices = @transform_4, window_bounds = array<i64: 1, 2560>}, {transform_indices = @transform_5, window_bounds = array<i64: 8, 66>}]} {
    %c0 = arith.constant 0 : index
    %c0_0 = arith.constant 0 : index
    %0 = vector.load %arg1[%c0, %c0_0] : memref<8x66xf32, #tpu.memory_space<vmem>>, vector<8x66xf32>
    %c0_1 = arith.constant 0 : index
    %c0_2 = arith.constant 0 : index
    %1 = vector.load %arg2[%c0_1, %c0_2] : memref<66x50xf32, #tpu.memory_space<vmem>>, vector<66x50xf32>
    %cst = arith.constant dense<0.000000e+00> : vector<8x50xf32>
    %2 = tpu.matmul %0, %1, %cst {dimension_numbers = #tpu.dot_dimension_numbers<[1], [0], [0], [1], [0, 0, 1, 1], [], []>} : vector<8x66xf32>, vector<66x50xf32>, vector<8x50xf32> -> vector<8x50xf32>
    %c0_3 = arith.constant 0 : index
    %c0_4 = arith.constant 0 : index
    %3 = vector.load %arg3[%c0_3, %c0_4] : memref<1x50xf32, #tpu.memory_space<vmem>>, vector<1x50xf32>
    %4 = vector.broadcast %3 : vector<1x50xf32> to vector<8x50xf32>
    %5 = arith.addf %2, %4 : vector<8x50xf32>
    %6 = math.tanh %5 : vector<8x50xf32>
    %c0_5 = arith.constant 0 : index
    %c0_6 = arith.constant 0 : index
    %7 = vector.load %arg4[%c0_5, %c0_6] : memref<50x2560xf32, #tpu.memory_space<vmem>>, vector<50x2560xf32>
    %cst_7 = arith.constant dense<0.000000e+00> : vector<8x2560xf32>
    %8 = tpu.matmul %6, %7, %cst_7 {dimension_numbers = #tpu.dot_dimension_numbers<[1], [0], [0], [1], [0, 0, 1, 1], [], []>} : vector<8x50xf32>, vector<50x2560xf32>, vector<8x2560xf32> -> vector<8x2560xf32>
    %c0_8 = arith.constant 0 : index
    %c0_9 = arith.constant 0 : index
    %9 = vector.load %arg5[%c0_8, %c0_9] : memref<1x2560xf32, #tpu.memory_space<vmem>>, vector<1x2560xf32>
    %10 = vector.broadcast %9 : vector<1x2560xf32> to vector<8x2560xf32>
    %11 = arith.addf %8, %10 : vector<8x2560xf32>
    %12 = vector.extract_strided_slice %11 {offsets = [0, 0], sizes = [8, 128], strides = [1, 1]} : vector<8x2560xf32> to vector<8x128xf32>
    %13 = vector.extract_strided_slice %11 {offsets = [0, 128], sizes = [8, 128], strides = [1, 1]} : vector<8x2560xf32> to vector<8x128xf32>
    %14 = arith.maximumf %12, %13 : vector<8x128xf32>
    %15 = vector.extract_strided_slice %11 {offsets = [0, 256], sizes = [8, 128], strides = [1, 1]} : vector<8x2560xf32> to vector<8x128xf32>
    %16 = arith.maximumf %14, %15 : vector<8x128xf32>
    %17 = vector.extract_strided_slice %11 {offsets = [0, 384], sizes = [8, 128], strides = [1, 1]} : vector<8x2560xf32> to vector<8x128xf32>
    %18 = arith.maximumf %16, %17 : vector<8x128xf32>
    %19 = vector.extract_strided_slice %11 {offsets = [0, 512], sizes = [8, 128], strides = [1, 1]} : vector<8x2560xf32> to vector<8x128xf32>
    %20 = arith.maximumf %18, %19 : vector<8x128xf32>
    %21 = vector.extract_strided_slice %11 {offsets = [0, 640], sizes = [8, 128], strides = [1, 1]} : vector<8x2560xf32> to vector<8x128xf32>
    %22 = arith.maximumf %20, %21 : vector<8x128xf32>
    %23 = vector.extract_strided_slice %11 {offsets = [0, 768], sizes = [8, 128], strides = [1, 1]} : vector<8x2560xf32> to vector<8x128xf32>
    %24 = arith.maximumf %22, %23 : vector<8x128xf32>
    %25 = vector.extract_strided_slice %11 {offsets = [0, 896], sizes = [8, 128], strides = [1, 1]} : vector<8x2560xf32> to vector<8x128xf32>
    %26 = arith.maximumf %24, %25 : vector<8x128xf32>
    %27 = vector.extract_strided_slice %11 {offsets = [0, 1024], sizes = [8, 128], strides = [1, 1]} : vector<8x2560xf32> to vector<8x128xf32>
    %28 = arith.maximumf %26, %27 : vector<8x128xf32>
    %29 = vector.extract_strided_slice %11 {offsets = [0, 1152], sizes = [8, 128], strides = [1, 1]} : vector<8x2560xf32> to vector<8x128xf32>
    %30 = arith.maximumf %28, %29 : vector<8x128xf32>
    %31 = vector.extract_strided_slice %11 {offsets = [0, 1280], sizes = [8, 128], strides = [1, 1]} : vector<8x2560xf32> to vector<8x128xf32>
    %32 = arith.maximumf %30, %31 : vector<8x128xf32>
    %33 = vector.extract_strided_slice %11 {offsets = [0, 1408], sizes = [8, 128], strides = [1, 1]} : vector<8x2560xf32> to vector<8x128xf32>
    %34 = arith.maximumf %32, %33 : vector<8x128xf32>
    %35 = vector.extract_strided_slice %11 {offsets = [0, 1536], sizes = [8, 128], strides = [1, 1]} : vector<8x2560xf32> to vector<8x128xf32>
    %36 = arith.maximumf %34, %35 : vector<8x128xf32>
    %37 = vector.extract_strided_slice %11 {offsets = [0, 1664], sizes = [8, 128], strides = [1, 1]} : vector<8x2560xf32> to vector<8x128xf32>
    %38 = arith.maximumf %36, %37 : vector<8x128xf32>
    %39 = vector.extract_strided_slice %11 {offsets = [0, 1792], sizes = [8, 128], strides = [1, 1]} : vector<8x2560xf32> to vector<8x128xf32>
    %40 = arith.maximumf %38, %39 : vector<8x128xf32>
    %41 = vector.extract_strided_slice %11 {offsets = [0, 1920], sizes = [8, 128], strides = [1, 1]} : vector<8x2560xf32> to vector<8x128xf32>
    %42 = arith.maximumf %40, %41 : vector<8x128xf32>
    %43 = vector.extract_strided_slice %11 {offsets = [0, 2048], sizes = [8, 128], strides = [1, 1]} : vector<8x2560xf32> to vector<8x128xf32>
    %44 = arith.maximumf %42, %43 : vector<8x128xf32>
    %45 = vector.extract_strided_slice %11 {offsets = [0, 2176], sizes = [8, 128], strides = [1, 1]} : vector<8x2560xf32> to vector<8x128xf32>
    %46 = arith.maximumf %44, %45 : vector<8x128xf32>
    %47 = vector.extract_strided_slice %11 {offsets = [0, 2304], sizes = [8, 128], strides = [1, 1]} : vector<8x2560xf32> to vector<8x128xf32>
    %48 = arith.maximumf %46, %47 : vector<8x128xf32>
    %49 = vector.extract_strided_slice %11 {offsets = [0, 2432], sizes = [8, 128], strides = [1, 1]} : vector<8x2560xf32> to vector<8x128xf32>
    %50 = arith.maximumf %48, %49 : vector<8x128xf32>
    %51 = vector.extract_strided_slice %11 {offsets = [0, 128], sizes = [8, 128], strides = [1, 1]} : vector<8x2560xf32> to vector<8x128xf32>
    %52 = arith.subf %51, %50 : vector<8x128xf32>
    %53 = math.exp %52 : vector<8x128xf32>
    %54 = vector.extract_strided_slice %11 {offsets = [0, 0], sizes = [8, 128], strides = [1, 1]} : vector<8x2560xf32> to vector<8x128xf32>
    %55 = arith.subf %54, %50 : vector<8x128xf32>
    %56 = math.exp %55 : vector<8x128xf32>
    %57 = arith.addf %53, %56 : vector<8x128xf32>
    %58 = vector.extract_strided_slice %11 {offsets = [0, 256], sizes = [8, 128], strides = [1, 1]} : vector<8x2560xf32> to vector<8x128xf32>
    %59 = arith.subf %58, %50 : vector<8x128xf32>
    %60 = math.exp %59 : vector<8x128xf32>
    %61 = arith.addf %57, %60 : vector<8x128xf32>
    %62 = vector.extract_strided_slice %11 {offsets = [0, 384], sizes = [8, 128], strides = [1, 1]} : vector<8x2560xf32> to vector<8x128xf32>
    %63 = arith.subf %62, %50 : vector<8x128xf32>
    %64 = math.exp %63 : vector<8x128xf32>
    %65 = arith.addf %61, %64 : vector<8x128xf32>
    %66 = vector.extract_strided_slice %11 {offsets = [0, 512], sizes = [8, 128], strides = [1, 1]} : vector<8x2560xf32> to vector<8x128xf32>
    %67 = arith.subf %66, %50 : vector<8x128xf32>
    %68 = math.exp %67 : vector<8x128xf32>
    %69 = arith.addf %65, %68 : vector<8x128xf32>
    %70 = vector.extract_strided_slice %11 {offsets = [0, 640], sizes = [8, 128], strides = [1, 1]} : vector<8x2560xf32> to vector<8x128xf32>
    %71 = arith.subf %70, %50 : vector<8x128xf32>
    %72 = math.exp %71 : vector<8x128xf32>
    %73 = arith.addf %69, %72 : vector<8x128xf32>
    %74 = vector.extract_strided_slice %11 {offsets = [0, 768], sizes = [8, 128], strides = [1, 1]} : vector<8x2560xf32> to vector<8x128xf32>
    %75 = arith.subf %74, %50 : vector<8x128xf32>
    %76 = math.exp %75 : vector<8x128xf32>
    %77 = arith.addf %73, %76 : vector<8x128xf32>
    %78 = vector.extract_strided_slice %11 {offsets = [0, 896], sizes = [8, 128], strides = [1, 1]} : vector<8x2560xf32> to vector<8x128xf32>
    %79 = arith.subf %78, %50 : vector<8x128xf32>
    %80 = math.exp %79 : vector<8x128xf32>
    %81 = arith.addf %77, %80 : vector<8x128xf32>
    %82 = vector.extract_strided_slice %11 {offsets = [0, 1024], sizes = [8, 128], strides = [1, 1]} : vector<8x2560xf32> to vector<8x128xf32>
    %83 = arith.subf %82, %50 : vector<8x128xf32>
    %84 = math.exp %83 : vector<8x128xf32>
    %85 = arith.addf %81, %84 : vector<8x128xf32>
    %86 = vector.extract_strided_slice %11 {offsets = [0, 1152], sizes = [8, 128], strides = [1, 1]} : vector<8x2560xf32> to vector<8x128xf32>
    %87 = arith.subf %86, %50 : vector<8x128xf32>
    %88 = math.exp %87 : vector<8x128xf32>
    %89 = arith.addf %85, %88 : vector<8x128xf32>
    %90 = vector.extract_strided_slice %11 {offsets = [0, 1280], sizes = [8, 128], strides = [1, 1]} : vector<8x2560xf32> to vector<8x128xf32>
    %91 = arith.subf %90, %50 : vector<8x128xf32>
    %92 = math.exp %91 : vector<8x128xf32>
    %93 = arith.addf %89, %92 : vector<8x128xf32>
    %94 = vector.extract_strided_slice %11 {offsets = [0, 1408], sizes = [8, 128], strides = [1, 1]} : vector<8x2560xf32> to vector<8x128xf32>
    %95 = arith.subf %94, %50 : vector<8x128xf32>
    %96 = math.exp %95 : vector<8x128xf32>
    %97 = arith.addf %93, %96 : vector<8x128xf32>
    %98 = vector.extract_strided_slice %11 {offsets = [0, 1536], sizes = [8, 128], strides = [1, 1]} : vector<8x2560xf32> to vector<8x128xf32>
    %99 = arith.subf %98, %50 : vector<8x128xf32>
    %100 = math.exp %99 : vector<8x128xf32>
    %101 = arith.addf %97, %100 : vector<8x128xf32>
    %102 = vector.extract_strided_slice %11 {offsets = [0, 1664], sizes = [8, 128], strides = [1, 1]} : vector<8x2560xf32> to vector<8x128xf32>
    %103 = arith.subf %102, %50 : vector<8x128xf32>
    %104 = math.exp %103 : vector<8x128xf32>
    %105 = arith.addf %101, %104 : vector<8x128xf32>
    %106 = vector.extract_strided_slice %11 {offsets = [0, 1792], sizes = [8, 128], strides = [1, 1]} : vector<8x2560xf32> to vector<8x128xf32>
    %107 = arith.subf %106, %50 : vector<8x128xf32>
    %108 = math.exp %107 : vector<8x128xf32>
    %109 = arith.addf %105, %108 : vector<8x128xf32>
    %110 = vector.extract_strided_slice %11 {offsets = [0, 1920], sizes = [8, 128], strides = [1, 1]} : vector<8x2560xf32> to vector<8x128xf32>
    %111 = arith.subf %110, %50 : vector<8x128xf32>
    %112 = math.exp %111 : vector<8x128xf32>
    %113 = arith.addf %109, %112 : vector<8x128xf32>
    %114 = vector.extract_strided_slice %11 {offsets = [0, 2048], sizes = [8, 128], strides = [1, 1]} : vector<8x2560xf32> to vector<8x128xf32>
    %115 = arith.subf %114, %50 : vector<8x128xf32>
    %116 = math.exp %115 : vector<8x128xf32>
    %117 = arith.addf %113, %116 : vector<8x128xf32>
    %118 = vector.extract_strided_slice %11 {offsets = [0, 2176], sizes = [8, 128], strides = [1, 1]} : vector<8x2560xf32> to vector<8x128xf32>
    %119 = arith.subf %118, %50 : vector<8x128xf32>
    %120 = math.exp %119 : vector<8x128xf32>
    %121 = arith.addf %117, %120 : vector<8x128xf32>
    %122 = vector.extract_strided_slice %11 {offsets = [0, 2304], sizes = [8, 128], strides = [1, 1]} : vector<8x2560xf32> to vector<8x128xf32>
    %123 = arith.subf %122, %50 : vector<8x128xf32>
    %124 = math.exp %123 : vector<8x128xf32>
    %125 = arith.addf %121, %124 : vector<8x128xf32>
    %126 = vector.extract_strided_slice %11 {offsets = [0, 2432], sizes = [8, 128], strides = [1, 1]} : vector<8x2560xf32> to vector<8x128xf32>
    %127 = arith.subf %126, %50 : vector<8x128xf32>
    %128 = math.exp %127 : vector<8x128xf32>
    %129 = arith.addf %125, %128 : vector<8x128xf32>
    %130 = tpu.reciprocal %129 {approx = true} : vector<8x128xf32> -> vector<8x128xf32>
    %131 = arith.mulf %129, %130 : vector<8x128xf32>
    %cst_10 = arith.constant 2.000000e+00 : f32
    %132 = vector.broadcast %cst_10 : f32 to vector<8x128xf32>
    %133 = arith.subf %132, %131 : vector<8x128xf32>
    %134 = arith.mulf %130, %133 : vector<8x128xf32>
    %135 = arith.mulf %53, %134 : vector<8x128xf32>
    %136 = vector.extract_strided_slice %135 {offsets = [0, 0], sizes = [8, 66], strides = [1, 1]} : vector<8x128xf32> to vector<8x66xf32>
    %137 = arith.mulf %0, %136 : vector<8x66xf32>
    %c0_11 = arith.constant 0 : index
    %c0_12 = arith.constant 0 : index
    %138 = vector.load %arg6[%c0_11, %c0_12] : memref<8x66xf32, #tpu.memory_space<vmem>>, vector<8x66xf32>
    tpu.vector_store %arg6[%c0_11, %c0_12], %137 {strides = array<i32>} : memref<8x66xf32, #tpu.memory_space<vmem>>, vector<8x66xf32>,
    return
  }
  func.func @transform_0(%arg0: i32) -> (i32, i32) {
    %c0_i32 = arith.constant 0 : i32
    %c0_i32_0 = arith.constant 0 : i32
    return %arg0, %c0_i32 : i32, i32
  }
  func.func @transform_1(%arg0: i32) -> (i32, i32) {
    %c0_i32 = arith.constant 0 : i32
    %c0_i32_0 = arith.constant 0 : i32
    %c0_i32_1 = arith.constant 0 : i32
    return %c0_i32, %c0_i32_0 : i32, i32
  }
  func.func @transform_2(%arg0: i32) -> (i32, i32) {
    %c0_i32 = arith.constant 0 : i32
    %c0_i32_0 = arith.constant 0 : i32
    %c0_i32_1 = arith.constant 0 : i32
    return %c0_i32, %c0_i32_0 : i32, i32
  }
  func.func @transform_3(%arg0: i32) -> (i32, i32) {
    %c0_i32 = arith.constant 0 : i32
    %c0_i32_0 = arith.constant 0 : i32
    %c0_i32_1 = arith.constant 0 : i32
    return %c0_i32, %c0_i32_0 : i32, i32
  }
  func.func @transform_4(%arg0: i32) -> (i32, i32) {
    %c0_i32 = arith.constant 0 : i32
    %c0_i32_0 = arith.constant 0 : i32
    %c0_i32_1 = arith.constant 0 : i32
    return %c0_i32, %c0_i32_0 : i32, i32
  }
  func.func @transform_5(%arg0: i32) -> (i32, i32) {
    %c0_i32 = arith.constant 0 : i32
    %c0_i32_0 = arith.constant 0 : i32
    return %arg0, %c0_i32 : i32, i32
  }
}

</mosaic_0001>

<bundles_post_ra>
// kernel: tpu_custom_call.1
= control target key start
LH: loop header
LB: loop body
LE: loop exit
PB: predicated region body
PF: predicated region fallthrough
CT: control target
= control target key end

     0   :  { %10 = vsyncpa [#allocation3], 0  ;;  %s1252_s0 = inlined_call_operand.vmem [shape: f32[8,66], index: 0, kind: input, shape index: {}]   ;;  %s1253_s1 = inlined_call_operand.vmem [shape: f32[66,50], index: 1, kind: input, shape index: {}]   ;;  %s1254_s2 = inlined_call_operand.vmem [shape: f32[1,50], index: 2, kind: input, shape index: {}]   ;;  %s1255_s3 = inlined_call_operand.hbm [shape: f32[50,2560], index: 3, kind: input, shape index: {}]   ;;  %s1256_s4 = inlined_call_operand.vmem [shape: f32[1,2560], index: 4, kind: input, shape index: {}]   ;;  %s1257_s5 = inlined_call_operand.hbm [shape: f32[8,66], index: 5, kind: output, shape index: {}]  }
   0x1   :  { %11 = vsyncpa [#allocation4], 0  ;;  %s22_s20 = sshll.u32 %s1255_s3, 4  ;;  %s995_s21 = smov [#allocation2]   ;;  %s23_s20 = int_to_ptr.hbm [resolvable:$true] %s22_s20 }
   0x2   :  { %s24_s22 = sshll.u32 %s995_s21, 4  ;;  %s996_s23 = smov 2560   ;;  %s25_s22 = int_to_ptr.vmem [resolvable:$true] %s24_s22 }
   0x3   :  { %s997_s24 = smov 160  }
   0x4   :  { %30 = dma.hbm_to_vmem [thread:$0]  %s23_s20, 17920, %s25_s22, [#allocation3], %s996_s23, %s996_s23, %s997_s24  }
   0x5   :  { %991 = dma.done.wait [#allocation3], 17920  }
   0x6   :  { %992 = vsyncadd [#allocation3], 4294949376  ;;  %vm55_vm0 = vcmask 1041408   ;;  %v46_v0 = vld [vmem:[%s1253_s1 + $0x40] sm:$0x3]  ;;  %v45_v1 = vld [vmem:[%s1253_s1 + $0x38] sm:$0xff] }
   0x7   :  { %852 = vmatpush.msk.msra.mxu0 %vm55_vm0, %v46_v0  ;;  %v44_v2 = vld [vmem:[%s1253_s1 + $0x30] sm:$0xff]  ;;  %v200_v3 = vld [vmem:[#allocation2 + $0x3c0] sm:$0x3]  ;;  %v201_v4 = vld [vmem:[#allocation2 + $0x3c8] sm:$0x3]  ;;  %vm51_vm1 = vcmask 539648  }
   0x8   :  { %v43_v5 = vld [vmem:[%s1253_s1 + $0x28] sm:$0xff]  ;;  %854 = vmatpush.msk.msra.mxu1 %vm55_vm0, %v200_v3  ;;  %856 = vmatpush.msk.msra.mxu2 %vm55_vm0, %v201_v4  ;;  %v202_v6 = vld [vmem:[#allocation2 + $0x3d0] sm:$0x3]  ;;  %v180_v7 = vld [vmem:[#allocation2 + $0x320] sm:$0xff]  ;;  %vm266_vm2 = vcmask 408576   ;;  %s842_s27 = sshll.u32 %s1257_s5, 4  ;;  %s843_s27 = int_to_ptr.hbm [resolvable:$true] %s842_s27 }
   0x9   :  { %67 = vmatpush.msra.mxu0 %v45_v1  ;;  %v42_v8 = vld [vmem:[%s1253_s1 + $0x20] sm:$0xff]  ;;  %858 = vmatpush.msk.msra.mxu3 %vm55_vm0, %v202_v6  ;;  %v181_v9 = vld [vmem:[#allocation2 + $0x328] sm:$0xff]  ;;  %v182_v10 = vld [vmem:[#allocation2 + $0x330] sm:$0xff] }
   0xa   :  { %340 = vmatpush.msra.mxu1 %v180_v7  ;;  %360 = vmatpush.msra.mxu2 %v181_v9  ;;  %v160_v11 = vld [vmem:[#allocation2 + $0x280] sm:$0xff]  ;;  %v161_v12 = vld [vmem:[#allocation2 + $0x288] sm:$0xff]  ;;  %v162_v13 = vld [vmem:[#allocation2 + $0x290] sm:$0xff] }
   0xb   :  { %68 = vmatpush.msra.mxu0 %v44_v2  ;;  %380 = vmatpush.msra.mxu3 %v182_v10  ;;  %v140_v14 = vld [vmem:[#allocation2 + $0x1e0] sm:$0xff]  ;;  %v141_v15 = vld [vmem:[#allocation2 + $0x1e8] sm:$0xff]  ;;  %v41_v16 = vld [vmem:[%s1253_s1 + $0x18] sm:$0xff] }
   0xc   :  { %341 = vmatpush.msra.mxu1 %v160_v11  ;;  %361 = vmatpush.msra.mxu2 %v161_v12  ;;  %v142_v17 = vld [vmem:[#allocation2 + $0x1f0] sm:$0xff]  ;;  %v120_v18 = vld [vmem:[#allocation2 + $0x140] sm:$0xff]  ;;  %v121_v19 = vld [vmem:[#allocation2 + $0x148] sm:$0xff] }
   0xd   :  { %69 = vmatpush.msra.mxu0 %v43_v5  ;;  %381 = vmatpush.msra.mxu3 %v162_v13  ;;  %v40_v20 = vld [vmem:[%s1253_s1 + $0x10] sm:$0xff]  ;;  %v100_v22 = vld [vmem:[#allocation2 + $0xa0] sm:$0xff]  ;;  %v101_v23 = vld [vmem:[#allocation2 + $0xa8] sm:$0xff] }
   0xe   :  { %342 = vmatpush.msra.mxu1 %v140_v14  ;;  %362 = vmatpush.msra.mxu2 %v141_v15  ;;  %v122_v21 = vld [vmem:[#allocation2 + $0x150] sm:$0xff]  ;;  %v39_v24 = vld [vmem:[%s1253_s1 + $0x8] sm:$0xff]  ;;  %v80_v26 = vld [vmem:[#allocation2] sm:$0xff] }
   0xf   :  { %70 = vmatpush.msra.mxu0 %v42_v8  ;;  %382 = vmatpush.msra.mxu3 %v142_v17  ;;  %v102_v25 = vld [vmem:[#allocation2 + $0xb0] sm:$0xff]  ;;  %v81_v27 = vld [vmem:[#allocation2 + $0x8] sm:$0xff]  ;;  %v38_v28 = vld [vmem:[%s1253_s1] sm:$0xff] }
  0x10   :  { %343 = vmatpush.msra.mxu1 %v120_v18  ;;  %363 = vmatpush.msra.mxu2 %v121_v19  ;;  %v82_v29 = vld [vmem:[#allocation2 + $0x10] sm:$0xff]  ;;  %v1066_v30 = vld [vmem:[%s1252_s0] sm:$0xff]  ;;  %v203_v31 = vld [vmem:[#allocation2 + $0x3d8] sm:$0x3] }
  0x11   :  { %71 = vmatpush.msra.mxu0 %v41_v16  ;;  %383 = vmatpush.msra.mxu3 %v122_v21  ;;  %v206_v32 = vld [vmem:[#allocation2 + $0x3f0] sm:$0x3]  ;;  %v204_v33 = vld [vmem:[#allocation2 + $0x3e0] sm:$0x3]  ;;  %v205_v34 = vld [vmem:[#allocation2 + $0x3e8] sm:$0x3] }
  0x12   :  { %344 = vmatpush.msra.mxu1 %v100_v22  ;;  %364 = vmatpush.msra.mxu2 %v101_v23  ;;  %v183_v35 = vld [vmem:[#allocation2 + $0x338] sm:$0xff]  ;;  %v186_v36 = vld [vmem:[#allocation2 + $0x350] sm:$0xff]  ;;  %v184_v37 = vld [vmem:[#allocation2 + $0x340] sm:$0xff] }
  0x13   :  { %72 = vmatpush.msra.mxu0 %v40_v20  ;;  %384 = vmatpush.msra.mxu3 %v102_v25  ;;  %v185_v38 = vld [vmem:[#allocation2 + $0x348] sm:$0xff]  ;;  %v166_v39 = vld [vmem:[#allocation2 + $0x2b0] sm:$0xff]  ;;  %v163_v46 = vld [vmem:[#allocation2 + $0x298] sm:$0xff] }
  0x14   :  { %345 = vmatpush.msra.mxu1 %v80_v26  ;;  %365 = vmatpush.msra.mxu2 %v81_v27  ;;  %v146_v40 = vld [vmem:[#allocation2 + $0x210] sm:$0xff]  ;;  %v164_v47 = vld [vmem:[#allocation2 + $0x2a0] sm:$0xff]  ;;  %v165_v48 = vld [vmem:[#allocation2 + $0x2a8] sm:$0xff] }
  0x15   :  { %73 = vmatpush.msra.mxu0 %v39_v24  ;;  %385 = vmatpush.msra.mxu3 %v82_v29  ;;  %v126_v41 = vld [vmem:[#allocation2 + $0x170] sm:$0xff]  ;;  %v143_v50 = vld [vmem:[#allocation2 + $0x1f8] sm:$0xff]  ;;  %v144_v51 = vld [vmem:[#allocation2 + $0x200] sm:$0xff] }
  0x16   :  { %860 = vmatpush.msk.msrb.mxu1 %vm55_vm0, %v203_v31  ;;  %862 = vmatpush.msk.msrb.mxu2 %vm55_vm0, %v204_v33  ;;  %v106_v42 = vld [vmem:[#allocation2 + $0xd0] sm:$0xff]  ;;  %v145_v52 = vld [vmem:[#allocation2 + $0x208] sm:$0xff]  ;;  %v123_v54 = vld [vmem:[#allocation2 + $0x158] sm:$0xff] }
  0x17   :  { %74 = vmatpush.msra.mxu0 %v38_v28  ;;  %864 = vmatpush.msk.msrb.mxu3 %vm55_vm0, %v205_v34  ;;  %v86_v43 = vld [vmem:[#allocation2 + $0x30] sm:$0xff]  ;;  %v124_v55 = vld [vmem:[#allocation2 + $0x160] sm:$0xff]  ;;  %v125_v56 = vld [vmem:[#allocation2 + $0x168] sm:$0xff] }
  0x18   :  { %853 = vmatmul.msk.f32.vlgmr.msra.gmra.mxu0 %vm51_vm1, %v1066_v30  ;;  %400 = vmatpush.msrb.mxu1 %v183_v35  ;;  %v210_v44 = vld [vmem:[#allocation2 + $0x410] sm:$0x3]  ;;  %v103_v58 = vld [vmem:[#allocation2 + $0xb8] sm:$0xff]  ;;  %v104_v59 = vld [vmem:[#allocation2 + $0xc0] sm:$0xff] }
  0x19   :  { %866 = vmatpush.msk.msrb.mxu0 %vm55_vm0, %v206_v32  ;;  %420 = vmatpush.msrb.mxu2 %v184_v37  ;;  %v190_v45 = vld [vmem:[#allocation2 + $0x370] sm:$0xff]  ;;  %v105_v60 = vld [vmem:[#allocation2 + $0xc8] sm:$0xff]  ;;  %v83_v62 = vld [vmem:[#allocation2 + $0x18] sm:$0xff] }
  0x1a   :  { %440 = vmatpush.msrb.mxu3 %v185_v38  ;;  %401 = vmatpush.msrb.mxu1 %v163_v46  ;;  %v170_v49 = vld [vmem:[#allocation2 + $0x2d0] sm:$0xff]  ;;  %v84_v63 = vld [vmem:[#allocation2 + $0x20] sm:$0xff]  ;;  %v85_v0 = vld [vmem:[#allocation2 + $0x28] sm:$0xff] }
  0x1b   :  { %460 = vmatpush.msrb.mxu0 %v186_v36  ;;  %421 = vmatpush.msrb.mxu2 %v164_v47  ;;  %v150_v53 = vld [vmem:[#allocation2 + $0x230] sm:$0xff]  ;;  %v898_v2 = vld [vmem:[%s1254_s2] ss:$0 sm:$0xff]  ;;  %v207_v6 = vld [vmem:[#allocation2 + $0x3f8] sm:$0x3] }
  0x1c   :  { %441 = vmatpush.msrb.mxu3 %v165_v48  ;;  %402 = vmatpush.msrb.mxu1 %v143_v50  ;;  %v130_v57 = vld [vmem:[#allocation2 + $0x190] sm:$0xff]  ;;  %v208_v7 = vld [vmem:[#allocation2 + $0x400] sm:$0x3]  ;;  %v209_v8 = vld [vmem:[#allocation2 + $0x408] sm:$0x3] }
  0x1d   :  { %461 = vmatpush.msrb.mxu0 %v166_v39  ;;  %422 = vmatpush.msrb.mxu2 %v144_v51  ;;  %v110_v61 = vld [vmem:[#allocation2 + $0xf0] sm:$0xff]  ;;  %v187_v10 = vld [vmem:[#allocation2 + $0x358] sm:$0xff]  ;;  %v188_v11 = vld [vmem:[#allocation2 + $0x360] sm:$0xff] }
  0x1e   :  { %442 = vmatpush.msrb.mxu3 %v145_v52  ;;  %403 = vmatpush.msrb.mxu1 %v123_v54  ;;  %v90_v1 = vld [vmem:[#allocation2 + $0x50] sm:$0xff]  ;;  %v189_v12 = vld [vmem:[#allocation2 + $0x368] sm:$0xff]  ;;  %v167_v14 = vld [vmem:[#allocation2 + $0x2b8] sm:$0xff] }
  0x1f   :  { %462 = vmatpush.msrb.mxu0 %v146_v40  ;;  %423 = vmatpush.msrb.mxu2 %v124_v55  ;;  %v214_v9 = vld [vmem:[#allocation2 + $0x430] sm:$0x3]  ;;  %v168_v15 = vld [vmem:[#allocation2 + $0x2c0] sm:$0xff]  ;;  %v169_v16 = vld [vmem:[#allocation2 + $0x2c8] sm:$0xff] }
  0x20   :  { %443 = vmatpush.msrb.mxu3 %v125_v56  ;;  %404 = vmatpush.msrb.mxu1 %v103_v58  ;;  %v194_v13 = vld [vmem:[#allocation2 + $0x390] sm:$0xff]  ;;  %v147_v18 = vld [vmem:[#allocation2 + $0x218] sm:$0xff]  ;;  %v148_v19 = vld [vmem:[#allocation2 + $0x220] sm:$0xff] }
  0x21   :  { %463 = vmatpush.msrb.mxu0 %v126_v41  ;;  %424 = vmatpush.msrb.mxu2 %v104_v59  ;;  %v174_v17 = vld [vmem:[#allocation2 + $0x2f0] sm:$0xff]  ;;  %v149_v20 = vld [vmem:[#allocation2 + $0x228] sm:$0xff]  ;;  %v127_v22 = vld [vmem:[#allocation2 + $0x178] sm:$0xff] }
  0x22   :  { %444 = vmatpush.msrb.mxu3 %v105_v60  ;;  %405 = vmatpush.msrb.mxu1 %v83_v62  ;;  %v154_v21 = vld [vmem:[#allocation2 + $0x250] sm:$0xff]  ;;  %v128_v23 = vld [vmem:[#allocation2 + $0x180] sm:$0xff]  ;;  %v129_v24 = vld [vmem:[#allocation2 + $0x188] sm:$0xff] }
  0x23   :  { %464 = vmatpush.msrb.mxu0 %v106_v42  ;;  %425 = vmatpush.msrb.mxu2 %v84_v63  ;;  %v107_v25 = vld [vmem:[#allocation2 + $0xd8] sm:$0xff]  ;;  %v134_v26 = vld [vmem:[#allocation2 + $0x1b0] sm:$0xff]  ;;  %v108_v27 = vld [vmem:[#allocation2 + $0xe0] sm:$0xff] }
  0x24   :  { %445 = vmatpush.msrb.mxu3 %v85_v0  ;;  %v109_v28 = vld [vmem:[#allocation2 + $0xe8] sm:$0xff]  ;;  %v87_v29 = vld [vmem:[#allocation2 + $0x38] sm:$0xff]  ;;  %v114_v31 = vld [vmem:[#allocation2 + $0x110] sm:$0xff] }
  0x25   :  { %465 = vmatpush.msrb.mxu0 %v86_v43  ;;  %v88_v32 = vld [vmem:[#allocation2 + $0x40] sm:$0xff]  ;;  %v89_v33 = vld [vmem:[#allocation2 + $0x48] sm:$0xff]  ;;  %v211_v34 = vld [vmem:[#allocation2 + $0x418] sm:$0x3] }
  0x26   :  { %v94_v35 = vld [vmem:[#allocation2 + $0x70] sm:$0xff]  ;;  %v212_v36 = vld [vmem:[#allocation2 + $0x420] sm:$0x3]  ;;  %v213_v37 = vld [vmem:[#allocation2 + $0x428] sm:$0x3] }
  0x27   :  { %874 = vmatpush.msk.msra.mxu0 %vm55_vm0, %v210_v44  ;;  %v218_v38 = vld [vmem:[#allocation2 + $0x450] sm:$0x3]  ;;  %v191_v39 = vld [vmem:[#allocation2 + $0x378] sm:$0xff]  ;;  %v192_v40 = vld [vmem:[#allocation2 + $0x380] sm:$0xff] }
  0x28   :  { %v193_v41 = vld [vmem:[#allocation2 + $0x388] sm:$0xff]  ;;  %v198_v42 = vld [vmem:[#allocation2 + $0x3b0] sm:$0xff]  ;;  %v171_v43 = vld [vmem:[#allocation2 + $0x2d8] sm:$0xff] }
  0x29   :  { %540 = vmatpush.msra.mxu0 %v190_v45  ;;  %v172_v44 = vld [vmem:[#allocation2 + $0x2e0] sm:$0xff]  ;;  %v173_v45 = vld [vmem:[#allocation2 + $0x2e8] sm:$0xff]  ;;  %v178_v46 = vld [vmem:[#allocation2 + $0x310] sm:$0xff] }
  0x2a   :  { %v151_v47 = vld [vmem:[#allocation2 + $0x238] sm:$0xff]  ;;  %v152_v48 = vld [vmem:[#allocation2 + $0x240] sm:$0xff]  ;;  %v158_v50 = vld [vmem:[#allocation2 + $0x270] sm:$0xff] }
  0x2b   :  { %541 = vmatpush.msra.mxu0 %v170_v49  ;;  %v153_v49 = vld [vmem:[#allocation2 + $0x248] sm:$0xff]  ;;  %v131_v51 = vld [vmem:[#allocation2 + $0x198] sm:$0xff]  ;;  %v132_v52 = vld [vmem:[#allocation2 + $0x1a0] sm:$0xff] }
  0x2c   :  { %v138_v54 = vld [vmem:[#allocation2 + $0x1d0] sm:$0xff]  ;;  %v111_v55 = vld [vmem:[#allocation2 + $0xf8] sm:$0xff]  ;;  %v112_v56 = vld [vmem:[#allocation2 + $0x100] sm:$0xff] }
  0x2d   :  { %542 = vmatpush.msra.mxu0 %v150_v53  ;;  %v133_v53 = vld [vmem:[#allocation2 + $0x1a8] sm:$0xff]  ;;  %v118_v58 = vld [vmem:[#allocation2 + $0x130] sm:$0xff]  ;;  %v91_v59 = vld [vmem:[#allocation2 + $0x58] sm:$0xff] }
  0x2e   :  { %v92_v60 = vld [vmem:[#allocation2 + $0x60] sm:$0xff]  ;;  %v98_v62 = vld [vmem:[#allocation2 + $0x90] sm:$0xff]  ;;  %v215_v63 = vld [vmem:[#allocation2 + $0x438] sm:$0x3] }
  0x2f   :  { %543 = vmatpush.msra.mxu0 %v130_v57  ;;  %v113_v57 = vld [vmem:[#allocation2 + $0x108] sm:$0xff]  ;;  %v216_v0 = vld [vmem:[#allocation2 + $0x440] sm:$0x3] }
  0x31   :  { %544 = vmatpush.msra.mxu0 %v110_v61  ;;  %v93_v61 = vld [vmem:[#allocation2 + $0x68] sm:$0xff] }
  0x33   :  { %545 = vmatpush.msra.mxu0 %v90_v1  ;;  %v217_v1 = vld [vmem:[#allocation2 + $0x448] sm:$0x3] }
  0x95   :  { %v76_v3 = vpop.f32.mrf.mxu0 }
  0x96   :  { %v77_v4 = vadd.f32 %v898_v2, %v76_v3  ;;  %v195_v2 = vld [vmem:[#allocation2 + $0x398] sm:$0xff]  ;;  %v196_v3 = vld [vmem:[#allocation2 + $0x3a0] sm:$0xff] }
  0x98   :  { %899 = vtanh.f32 %v77_v4  ;;  %v197_v4 = vld [vmem:[#allocation2 + $0x3a8] sm:$0xff] }
  0x9e   :  { %v1078_v5 = vpop.eup %899 }
  0x9f   :  { %855 = vmatmul.msk.f32.vlgmr.msra.gmra.mxu1 %vm266_vm2, %v1078_v5  ;;  %857 = vmatmul.msk.f32.vlgmr.msra.gmra.mxu2 %vm266_vm2, %v1078_v5 }
  0xa0   :  { %859 = vmatmul.msk.f32.vlgmr.msra.gmra.mxu3 %vm266_vm2, %v1078_v5  ;;  %867 = vmatmul.msk.f32.vlgmr.msrb.gmra.mxu0 %vm266_vm2, %v1078_v5 }
  0xa1   :  { %868 = vmatpush.msk.msra.mxu1 %vm55_vm0, %v207_v6  ;;  %870 = vmatpush.msk.msra.mxu2 %vm55_vm0, %v208_v7  ;;  %v175_v6 = vld [vmem:[#allocation2 + $0x2f8] sm:$0xff]  ;;  %v176_v7 = vld [vmem:[#allocation2 + $0x300] sm:$0xff] }
  0xa2   :  { %872 = vmatpush.msk.msra.mxu3 %vm55_vm0, %v209_v8  ;;  %882 = vmatpush.msk.msrb.mxu0 %vm55_vm0, %v214_v9  ;;  %v177_v8 = vld [vmem:[#allocation2 + $0x308] sm:$0xff]  ;;  %v155_v9 = vld [vmem:[#allocation2 + $0x258] sm:$0xff] }
  0xa3   :  { %480 = vmatpush.msra.mxu1 %v187_v10  ;;  %500 = vmatpush.msra.mxu2 %v188_v11  ;;  %v156_v10 = vld [vmem:[#allocation2 + $0x260] sm:$0xff]  ;;  %v157_v11 = vld [vmem:[#allocation2 + $0x268] sm:$0xff] }
  0xa4   :  { %520 = vmatpush.msra.mxu3 %v189_v12  ;;  %620 = vmatpush.msrb.mxu0 %v194_v13  ;;  %v135_v12 = vld [vmem:[#allocation2 + $0x1b8] sm:$0xff]  ;;  %v136_v13 = vld [vmem:[#allocation2 + $0x1c0] sm:$0xff] }
  0xa5   :  { %481 = vmatpush.msra.mxu1 %v167_v14  ;;  %501 = vmatpush.msra.mxu2 %v168_v15  ;;  %v137_v14 = vld [vmem:[#allocation2 + $0x1c8] sm:$0xff]  ;;  %v115_v15 = vld [vmem:[#allocation2 + $0x118] sm:$0xff] }
  0xa6   :  { %521 = vmatpush.msra.mxu3 %v169_v16  ;;  %621 = vmatpush.msrb.mxu0 %v174_v17  ;;  %v116_v16 = vld [vmem:[#allocation2 + $0x120] sm:$0xff]  ;;  %v117_v17 = vld [vmem:[#allocation2 + $0x128] sm:$0xff] }
  0xa7   :  { %482 = vmatpush.msra.mxu1 %v147_v18  ;;  %502 = vmatpush.msra.mxu2 %v148_v19  ;;  %v95_v18 = vld [vmem:[#allocation2 + $0x78] sm:$0xff]  ;;  %v96_v19 = vld [vmem:[#allocation2 + $0x80] sm:$0xff] }
  0xa8   :  { %522 = vmatpush.msra.mxu3 %v149_v20  ;;  %622 = vmatpush.msrb.mxu0 %v154_v21  ;;  %v97_v20 = vld [vmem:[#allocation2 + $0x88] sm:$0xff]  ;;  %v219_v21 = vld [vmem:[#allocation2 + $0x458] sm:$0x3] }
  0xa9   :  { %861 = vmatmul.msk.f32.vlgmr.msrb.gmra.mxu1 %vm266_vm2, %v1078_v5  ;;  %863 = vmatmul.msk.f32.vlgmr.msrb.gmra.mxu2 %vm266_vm2, %v1078_v5 }
  0xaa   :  { %865 = vmatmul.msk.f32.vlgmr.msrb.gmra.mxu3 %vm266_vm2, %v1078_v5  ;;  %483 = vmatpush.msra.mxu1 %v127_v22  ;;  %v199_v22 = vld [vmem:[#allocation2 + $0x3b8] sm:$0xff] }
  0xab   :  { %503 = vmatpush.msra.mxu2 %v128_v23  ;;  %523 = vmatpush.msra.mxu3 %v129_v24  ;;  %v179_v23 = vld [vmem:[#allocation2 + $0x318] sm:$0xff] }
  0xac   :  { %875 = vmatmul.msk.f32.vlgmr.msra.gmra.mxu0 %vm266_vm2, %v1078_v5  ;;  %484 = vmatpush.msra.mxu1 %v107_v25  ;;  %v159_v24 = vld [vmem:[#allocation2 + $0x278] sm:$0xff] }
  0xad   :  { %623 = vmatpush.msrb.mxu0 %v134_v26  ;;  %504 = vmatpush.msra.mxu2 %v108_v27  ;;  %v139_v25 = vld [vmem:[#allocation2 + $0x1d8] sm:$0xff] }
  0xae   :  { %524 = vmatpush.msra.mxu3 %v109_v28  ;;  %485 = vmatpush.msra.mxu1 %v87_v29  ;;  %v119_v26 = vld [vmem:[#allocation2 + $0x138] sm:$0xff]  ;;  %v220_v28 = vld [vmem:[%s1256_s4] sm:$0xff] }
  0xaf   :  { %624 = vmatpush.msrb.mxu0 %v114_v31  ;;  %505 = vmatpush.msra.mxu2 %v88_v32  ;;  %v99_v27 = vld [vmem:[#allocation2 + $0x98] sm:$0xff]  ;;  %v226_v31 = vperm.slane %v220_v28, 0  ;;  %v227_v32 = vperm.slane %v220_v28, 1 }
  0xb0   :  { %525 = vmatpush.msra.mxu3 %v89_v33  ;;  %876 = vmatpush.msk.msrb.mxu1 %vm55_vm0, %v211_v34 }
  0xb1   :  { %625 = vmatpush.msrb.mxu0 %v94_v35  ;;  %878 = vmatpush.msk.msrb.mxu2 %vm55_vm0, %v212_v36  ;;  %v228_v36 = vperm.slane %v220_v28, 2 }
  0xb2   :  { %880 = vmatpush.msk.msrb.mxu3 %vm55_vm0, %v213_v37  ;;  %560 = vmatpush.msrb.mxu1 %v191_v39 }
  0xb3   :  { %890 = vmatpush.msk.msra.mxu0 %vm55_vm0, %v218_v38  ;;  %580 = vmatpush.msrb.mxu2 %v192_v40 }
  0xb4   :  { %600 = vmatpush.msrb.mxu3 %v193_v41  ;;  %869 = vmatmul.msk.f32.vlgmr.msra.gmra.mxu1 %vm266_vm2, %v1078_v5 }
  0xb5   :  { %700 = vmatpush.msra.mxu0 %v198_v42  ;;  %871 = vmatmul.msk.f32.vlgmr.msra.gmra.mxu2 %vm266_vm2, %v1078_v5  ;;  %v230_v42 = vperm.slane %v220_v28, 4 }
  0xb6   :  { %873 = vmatmul.msk.f32.vlgmr.msra.gmra.mxu3 %vm266_vm2, %v1078_v5  ;;  %883 = vmatmul.msk.f32.vlgmr.msrb.gmra.mxu0 %vm266_vm2, %v1078_v5 }
  0xb7   :  { %561 = vmatpush.msrb.mxu1 %v171_v43  ;;  %581 = vmatpush.msrb.mxu2 %v172_v44  ;;  %v231_v44 = vperm.slane %v220_v28, 5 }
  0xb8   :  { %601 = vmatpush.msrb.mxu3 %v173_v45  ;;  %701 = vmatpush.msra.mxu0 %v178_v46  ;;  %v232_v46 = vperm.slane %v220_v28, 6 }
  0xb9   :  { %562 = vmatpush.msrb.mxu1 %v151_v47  ;;  %582 = vmatpush.msrb.mxu2 %v152_v48 }
  0xba   :  { %602 = vmatpush.msrb.mxu3 %v153_v49  ;;  %702 = vmatpush.msra.mxu0 %v158_v50 }
  0xbb   :  { %563 = vmatpush.msrb.mxu1 %v131_v51  ;;  %583 = vmatpush.msrb.mxu2 %v132_v52 }
  0xbc   :  { %603 = vmatpush.msrb.mxu3 %v133_v53  ;;  %703 = vmatpush.msra.mxu0 %v138_v54 }
  0xbd   :  { %564 = vmatpush.msrb.mxu1 %v111_v55  ;;  %584 = vmatpush.msrb.mxu2 %v112_v56  ;;  %v233_v55 = vperm.slane %v220_v28, 7 }
  0xbe   :  { %604 = vmatpush.msrb.mxu3 %v113_v57  ;;  %704 = vmatpush.msra.mxu0 %v118_v58  ;;  %v221_v58 = vld [vmem:[%s1256_s4 + $0x8] sm:$0xff] }
  0xbf   :  { %565 = vmatpush.msrb.mxu1 %v91_v59  ;;  %585 = vmatpush.msrb.mxu2 %v92_v60  ;;  %v234_v60 = vperm.slane %v221_v58, 0 }
  0xc0   :  { %605 = vmatpush.msrb.mxu3 %v93_v61  ;;  %705 = vmatpush.msra.mxu0 %v98_v62 }
  0xc1   :  { %877 = vmatmul.msk.f32.vlgmr.msrb.gmra.mxu1 %vm266_vm2, %v1078_v5  ;;  %879 = vmatmul.msk.f32.vlgmr.msrb.gmra.mxu2 %vm266_vm2, %v1078_v5 }
  0xc2   :  { %881 = vmatmul.msk.f32.vlgmr.msrb.gmra.mxu3 %vm266_vm2, %v1078_v5  ;;  %884 = vmatpush.msk.msra.mxu1 %vm55_vm0, %v215_v63  ;;  %v235_v63 = vperm.slane %v221_v58, 1 }
  0xc3   :  { %886 = vmatpush.msk.msra.mxu2 %vm55_vm0, %v216_v0  ;;  %888 = vmatpush.msk.msra.mxu3 %vm55_vm0, %v217_v1 }
  0xc4   :  { %891 = vmatmul.msk.f32.vlgmr.msra.gmra.mxu0 %vm266_vm2, %v1078_v5  ;;  %640 = vmatpush.msra.mxu1 %v195_v2 }
  0xc5   :  { %660 = vmatpush.msra.mxu2 %v196_v3  ;;  %680 = vmatpush.msra.mxu3 %v197_v4  ;;  %v236_v3 = vperm.slane %v221_v58, 2 }
  0xc6   :  { %641 = vmatpush.msra.mxu1 %v175_v6 }
  0xc7   :  { %661 = vmatpush.msra.mxu2 %v176_v7  ;;  %681 = vmatpush.msra.mxu3 %v177_v8 }
  0xc8   :  { %642 = vmatpush.msra.mxu1 %v155_v9  ;;  %v237_v9 = vperm.slane %v221_v58, 3 }
  0xc9   :  { %662 = vmatpush.msra.mxu2 %v156_v10  ;;  %682 = vmatpush.msra.mxu3 %v157_v11  ;;  %v238_v11 = vperm.slane %v221_v58, 4 }
  0xca   :  { %643 = vmatpush.msra.mxu1 %v135_v12 }
  0xcb   :  { %663 = vmatpush.msra.mxu2 %v136_v13  ;;  %683 = vmatpush.msra.mxu3 %v137_v14 }
  0xcc   :  { %644 = vmatpush.msra.mxu1 %v115_v15 }
  0xcd   :  { %664 = vmatpush.msra.mxu2 %v116_v16  ;;  %684 = vmatpush.msra.mxu3 %v117_v17  ;;  %v239_v17 = vperm.slane %v221_v58, 5 }
  0xce   :  { %645 = vmatpush.msra.mxu1 %v95_v18 }
  0xcf   :  { %665 = vmatpush.msra.mxu2 %v96_v19  ;;  %685 = vmatpush.msra.mxu3 %v97_v20  ;;  %v240_v20 = vperm.slane %v221_v58, 6 }
  0xd0   :  { %885 = vmatmul.msk.f32.vlgmr.msra.gmra.mxu1 %vm266_vm2, %v1078_v5  ;;  %887 = vmatmul.msk.f32.vlgmr.msra.gmra.mxu2 %vm266_vm2, %v1078_v5 }
  0xd1   :  { %889 = vmatmul.msk.f32.vlgmr.msra.gmra.mxu3 %vm266_vm2, %v1078_v5  ;;  %892 = vmatpush.msk.msrb.mxu1 %vm55_vm0, %v219_v21 }
  0xd3   :  { %720 = vmatpush.msrb.mxu1 %v199_v22 }
  0xd5   :  { %721 = vmatpush.msrb.mxu1 %v179_v23 }
  0xd7   :  { %722 = vmatpush.msrb.mxu1 %v159_v24  ;;  %v241_v24 = vperm.slane %v221_v58, 7 }
  0xd9   :  { %723 = vmatpush.msrb.mxu1 %v139_v25 }
  0xdb   :  { %724 = vmatpush.msrb.mxu1 %v119_v26 }
  0xdd   :  { %725 = vmatpush.msrb.mxu1 %v99_v27  ;;  %v222_v27 = vld [vmem:[%s1256_s4 + $0x10] sm:$0xf]  ;;  %s998_s4 = smov [#allocation5]  }
  0xde   :  { %893 = vmatmul.msk.f32.vlgmr.msrb.gmra.mxu1 %vm266_vm2, %v1078_v5  ;;  %v229_v5 = vperm.slane %v220_v28, 3  ;;  %s840_s24 = sshll.u32 %s998_s4, 4  ;;  %s841_s24 = int_to_ptr.vmem [resolvable:$true] %s840_s24 }
 0x11c   :  { %v347_v29 = vpop.f32.mrf.mxu1 }
 0x11d   :  { %v1135_v34 = vadd.f32 %v347_v29, %v226_v31  ;;  %v467_v50 = vpop.f32.mrf.mxu0  ;;  %v242_v31 = vperm.slane %v222_v27, 0 }
 0x11e   :  { %v1152_v53 = vadd.f32 %v467_v50, %v232_v46  ;;  %v245_v46 = vperm.slane %v222_v27, 3 }
 0x122   :  { %v367_v33 = vpop.f32.mrf.mxu2 }
 0x123   :  { %v1137_v35 = vadd.f32 %v367_v33, %v227_v32  ;;  %v387_v37 = vpop.f32.mrf.mxu3  ;;  %v243_v32 = vperm.slane %v222_v27, 1 }
 0x124   :  { %v1141_v39 = vadd.f32 %v387_v37, %v228_v36  ;;  %v244_v36 = vperm.slane %v222_v27, 2 }
 0x125   :  { %v730_v38 = vmax.f32 %v1135_v34, %v1137_v35 }
 0x126   :  { %v407_v40 = vpop.f32.mrf.mxu1 }
 0x127   :  { %v731_v41 = vmax.f32 %v730_v38, %v1141_v39  ;;  %v1144_v43 = vadd.f32 %v407_v40, %v229_v5 }
 0x129   :  { %v732_v47 = vmax.f32 %v731_v41, %v1144_v43  ;;  %v547_v6 = vpop.f32.mrf.mxu0 }
 0x12a   :  { %v1168_v8 = vadd.f32 %v547_v6, %v236_v3 }
 0x12c   :  { %v427_v45 = vpop.f32.mrf.mxu2 }
 0x12d   :  { %v1147_v48 = vadd.f32 %v427_v45, %v230_v42  ;;  %v447_v49 = vpop.f32.mrf.mxu3 }
 0x12e   :  { %v1150_v52 = vadd.f32 %v447_v49, %v231_v44 }
 0x12f   :  { %v733_v51 = vmax.f32 %v732_v47, %v1147_v48 }
 0x131   :  { %v734_v54 = vmax.f32 %v733_v51, %v1150_v52  ;;  %v487_v56 = vpop.f32.mrf.mxu1 }
 0x132   :  { %v1159_v59 = vadd.f32 %v487_v56, %v233_v55 }
 0x133   :  { %v735_v57 = vmax.f32 %v734_v54, %v1152_v53  ;;  %v627_v22 = vpop.f32.mrf.mxu0 }
 0x134   :  { %v1180_v26 = vadd.f32 %v627_v22, %v240_v20 }
 0x135   :  { %v736_v61 = vmax.f32 %v735_v57, %v1159_v59 }
 0x138   :  { %v507_v62 = vpop.f32.mrf.mxu2 }
 0x139   :  { %v1162_v0 = vadd.f32 %v507_v62, %v234_v60  ;;  %v527_v1 = vpop.f32.mrf.mxu3 }
 0x13a   :  { %v1165_v4 = vadd.f32 %v527_v1, %v235_v63 }
 0x13b   :  { %v737_v2 = vmax.f32 %v736_v61, %v1162_v0 }
 0x13d   :  { %v738_v7 = vmax.f32 %v737_v2, %v1165_v4 }
 0x13e   :  { %v567_v10 = vpop.f32.mrf.mxu1 }
 0x13f   :  { %v739_v12 = vmax.f32 %v738_v7, %v1168_v8  ;;  %v1171_v13 = vadd.f32 %v567_v10, %v237_v9 }
 0x141   :  { %v740_v16 = vmax.f32 %v739_v12, %v1171_v13  ;;  %v707_v40 = vpop.f32.mrf.mxu0 }
 0x142   :  { %v1194_v44 = vadd.f32 %v707_v40, %v244_v36 }
 0x144   :  { %v587_v14 = vpop.f32.mrf.mxu2 }
 0x145   :  { %v1173_v15 = vadd.f32 %v587_v14, %v238_v11  ;;  %v607_v18 = vpop.f32.mrf.mxu3 }
 0x146   :  { %v1177_v21 = vadd.f32 %v607_v18, %v239_v17 }
 0x147   :  { %v741_v19 = vmax.f32 %v740_v16, %v1173_v15 }
 0x149   :  { %v742_v23 = vmax.f32 %v741_v19, %v1177_v21 }
 0x14b   :  { %v743_v29 = vmax.f32 %v742_v23, %v1180_v26 }
 0x14d   :  { %v647_v25 = vpop.f32.mrf.mxu1 }
 0x14e   :  { %v1185_v28 = vadd.f32 %v647_v25, %v241_v24 }
 0x150   :  { %v744_v37 = vmax.f32 %v743_v29, %v1185_v28 }
 0x153   :  { %v667_v33 = vpop.f32.mrf.mxu2 }
 0x154   :  { %v1189_v38 = vadd.f32 %v667_v33, %v242_v31  ;;  %v687_v5 = vpop.f32.mrf.mxu3 }
 0x155   :  { %v1192_v42 = vadd.f32 %v687_v5, %v243_v32 }
 0x156   :  { %v745_v41 = vmax.f32 %v744_v37, %v1189_v38 }
 0x158   :  { %v746_v45 = vmax.f32 %v745_v41, %v1192_v42 }
 0x15a   :  { %v747_v47 = vmax.f32 %v746_v45, %v1194_v44 }
 0x15b   :  { %v727_v49 = vpop.f32.mrf.mxu1 }
 0x15c   :  { %v1198_v50 = vadd.f32 %v727_v49, %v245_v46 }
 0x15e   :  { %v1201_v51 = vmax.f32 %v747_v47, %v1198_v50 }
 0x160   :  { %v749_v54 = vsub.f32 %v1137_v35, %v1201_v51  ;;  %v752_v55 = vsub.f32 %v1135_v34, %v1201_v51  ;;  %v756_v56 = vsub.f32 %v1141_v39, %v1201_v51  ;;  %v760_v57 = vsub.f32 %v1144_v43, %v1201_v51 }
 0x161   :  { %v764_v62 = vsub.f32 %v1147_v48, %v1201_v51  ;;  %v768_v35 = vsub.f32 %v1150_v52, %v1201_v51  ;;  %v772_v39 = vsub.f32 %v1152_v53, %v1201_v51  ;;  %v776_v43 = vsub.f32 %v1159_v59, %v1201_v51 }
 0x162   :  { %v750_v58 = vmul.f32 1.442695, %v749_v54  ;;  %v753_v60 = vmul.f32 1.442695, %v752_v55  ;;  %v757_v61 = vmul.f32 1.442695, %v756_v56  ;;  %v780_v6 = vsub.f32 %v1162_v0, %v1201_v51 }
 0x163   :  { %v761_v63 = vmul.f32 1.442695, %v760_v57  ;;  %v765_v34 = vmul.f32 1.442695, %v764_v62  ;;  %v769_v1 = vmul.f32 1.442695, %v768_v35  ;;  %v784_v53 = vsub.f32 %v1165_v4, %v1201_v51 }
 0x164   :  { %901 = vpow2.f32 %v750_v58  ;;  %v773_v48 = vmul.f32 1.442695, %v772_v39  ;;  %v777_v9 = vmul.f32 1.442695, %v776_v43  ;;  %v781_v59 = vmul.f32 1.442695, %v780_v6 }
 0x165   :  { %903 = vpow2.f32 %v753_v60  ;;  %v788_v12 = vsub.f32 %v1168_v8, %v1201_v51  ;;  %v785_v17 = vmul.f32 1.442695, %v784_v53  ;;  %v792_v0 = vsub.f32 %v1171_v13, %v1201_v51 }
 0x166   :  { %905 = vpow2.f32 %v757_v61  ;;  %v796_v4 = vsub.f32 %v1173_v15, %v1201_v51  ;;  %v800_v8 = vsub.f32 %v1177_v21, %v1201_v51  ;;  %v804_v13 = vsub.f32 %v1180_v26, %v1201_v51 }
 0x167   :  { %907 = vpow2.f32 %v761_v63  ;;  %v789_v20 = vmul.f32 1.442695, %v788_v12  ;;  %v793_v24 = vmul.f32 1.442695, %v792_v0  ;;  %v808_v15 = vsub.f32 %v1185_v28, %v1201_v51 }
 0x168   :  { %909 = vpow2.f32 %v765_v34  ;;  %v797_v29 = vmul.f32 1.442695, %v796_v4  ;;  %v801_v33 = vmul.f32 1.442695, %v800_v8  ;;  %v805_v5 = vmul.f32 1.442695, %v804_v13 }
 0x169   :  { %911 = vpow2.f32 %v769_v1  ;;  %v812_v21 = vsub.f32 %v1189_v38, %v1201_v51  ;;  %v809_v45 = vmul.f32 1.442695, %v808_v15  ;;  %v816_v26 = vsub.f32 %v1192_v42, %v1201_v51 }
 0x16a   :  { %v1219_v2 = vpop.eup %901  ;;  %913 = vpow2.f32 %v773_v48  ;;  %v820_v28 = vsub.f32 %v1194_v44, %v1201_v51  ;;  %v824_v38 = vsub.f32 %v1198_v50, %v1201_v51 }
 0x16b   :  { %v904_v3 = vpop.eup %903  ;;  %915 = vpow2.f32 %v777_v9  ;;  %v813_v49 = vmul.f32 1.442695, %v812_v21  ;;  %v817_v56 = vmul.f32 1.442695, %v816_v26 }
 0x16c   :  { %v755_v52 = vadd.f32 %v904_v3, %v1219_v2  ;;  %v906_v7 = vpop.eup %905  ;;  %917 = vpow2.f32 %v781_v59  ;;  %v821_v60 = vmul.f32 1.442695, %v820_v28  ;;  %v825_v62 = vmul.f32 1.442695, %v824_v38 }
 0x16d   :  { %v908_v11 = vpop.eup %907  ;;  %919 = vpow2.f32 %v785_v17 }
 0x16e   :  { %v759_v10 = vadd.f32 %v906_v7, %v755_v52  ;;  %v910_v16 = vpop.eup %909  ;;  %921 = vpow2.f32 %v789_v20 }
 0x16f   :  { %v912_v19 = vpop.eup %911  ;;  %923 = vpow2.f32 %v793_v24 }
 0x170   :  { %v763_v14 = vadd.f32 %v908_v11, %v759_v10  ;;  %v914_v23 = vpop.eup %913  ;;  %925 = vpow2.f32 %v797_v29 }
 0x171   :  { %v916_v27 = vpop.eup %915  ;;  %927 = vpow2.f32 %v801_v33 }
 0x172   :  { %v767_v18 = vadd.f32 %v910_v16, %v763_v14  ;;  %v918_v32 = vpop.eup %917  ;;  %929 = vpow2.f32 %v805_v5 }
 0x173   :  { %v920_v37 = vpop.eup %919  ;;  %931 = vpow2.f32 %v809_v45 }
 0x174   :  { %v771_v22 = vadd.f32 %v912_v19, %v767_v18  ;;  %v922_v41 = vpop.eup %921  ;;  %933 = vpow2.f32 %v813_v49 }
 0x175   :  { %v924_v47 = vpop.eup %923  ;;  %935 = vpow2.f32 %v817_v56 }
 0x176   :  { %v775_v25 = vadd.f32 %v914_v23, %v771_v22  ;;  %v926_v55 = vpop.eup %925  ;;  %937 = vpow2.f32 %v821_v60 }
 0x177   :  { %v928_v58 = vpop.eup %927  ;;  %939 = vpow2.f32 %v825_v62 }
 0x178   :  { %v779_v31 = vadd.f32 %v916_v27, %v775_v25  ;;  %v930_v42 = vpop.eup %929 }
 0x179   :  { %v932_v35 = vpop.eup %931 }
 0x17a   :  { %v783_v36 = vadd.f32 %v918_v32, %v779_v31  ;;  %v934_v44 = vpop.eup %933 }
 0x17b   :  { %v936_v1 = vpop.eup %935 }
 0x17c   :  { %v787_v40 = vadd.f32 %v920_v37, %v783_v36  ;;  %v938_v3 = vpop.eup %937 }
 0x17d   :  { %v940_v50 = vpop.eup %939 }
 0x17e   :  { %v791_v46 = vadd.f32 %v922_v41, %v787_v40 }
 0x180   :  { %v795_v54 = vadd.f32 %v924_v47, %v791_v46 }
 0x182   :  { %v799_v57 = vadd.f32 %v926_v55, %v795_v54 }
 0x184   :  { %v803_v61 = vadd.f32 %v928_v58, %v799_v57 }
 0x186   :  { %v807_v63 = vadd.f32 %v930_v42, %v803_v61 }
 0x188   :  { %v811_v34 = vadd.f32 %v932_v35, %v807_v63 }
 0x18a   :  { %v815_v39 = vadd.f32 %v934_v44, %v811_v34 }
 0x18c   :  { %v819_v43 = vadd.f32 %v936_v1, %v815_v39 }
 0x18e   :  { %v823_v48 = vadd.f32 %v938_v3, %v819_v43 }
 0x190   :  { %v827_v51 = vadd.f32 %v940_v50, %v823_v48 }
 0x192   :  { %941 = vrcp.f32 %v827_v51 }
 0x198   :  { %v942_v6 = vpop.eup %941 }
 0x199   :  { %v829_v52 = vmul.f32 %v942_v6, %v827_v51 }
 0x19b   :  { %v830_v7 = vsub.f32 2.0, %v829_v52 }
 0x19d   :  { %v831_v9 = vmul.f32 %v942_v6, %v830_v7 }
 0x19f   :  { %v832_v53 = vmul.f32 %v1219_v2, %v831_v9 }
 0x1a1   :  { %v833_v10 = vmul.f32 %v832_v53, %v1066_v30 }
 0x1a3   :  { %834 = vst.msk [vmem:[#allocation5] sm:$0xff] %vm51_vm1, %v833_v10 }
 0x1a4   :  { %845 = dma.vmem_to_hbm [thread:$0]  %s841_s24, 128, %s843_s27, [#allocation4]  }
 0x1a5   :  { %993 = dma.done.wait [#allocation4], 128  }
 0x1a6   :  { %994 = vsyncadd [#allocation4], 4294967168 }
 0x1a7   :  { %850 = vsyncpa [#allocation3], 1 }
 0x1a8   :  { %851 = vsyncpa [#allocation4], 1 }

</bundles_post_ra>
